<compile_context>
chip_gen: v7x
topology: tpu7x:2x2x1
jax: 0.10.0
libtpu: 0.0.40
codegen_flags: <defaults>
</compile_context>

<pallas_src>
import functools
import math

import jax
import jax.numpy as jnp
from jax.experimental import pallas as pl
from jax.experimental.pallas import tpu as pltpu

# Conservative scoped-VMEM budget that is valid on v5e (128 MiB phys),
# v6e (128 MiB) and v7x (64 MiB).
VMEM_LIMIT = 32 * 1024 * 1024


def _pick_tile(dim, target, align):
    """Largest tile <= target that divides dim and respects TPU (8,128) tiling."""
    if dim <= target:
        return dim
    t = (target // align) * align
    while t >= align:
        if dim % t == 0:
            return t
        t -= align
    return dim


# ---------------- fused RMSNorm + QKV projection (single matmul) ----------------
def _norm_qkv_kernel(eps, x_ref, nw_ref, w_ref, o_ref):
    x = x_ref[...].astype(jnp.float32)
    ms = jnp.mean(x * x, axis=-1, keepdims=True)
    xn = x * jax.lax.rsqrt(ms + eps) * nw_ref[...].astype(jnp.float32)
    o_ref[...] = jnp.dot(
        xn, w_ref[...], preferred_element_type=jnp.float32
    ).astype(o_ref.dtype)


def norm_qkv(x2d, norm_w, wqkv, eps):
    n, d = x2d.shape
    f = wqkv.shape[1]
    tm = _pick_tile(n, 256, 8)
    tn = _pick_tile(f, 512, 128)
    return pl.pallas_call(
        functools.partial(_norm_qkv_kernel, eps),
        out_shape=jax.ShapeDtypeStruct((n, f), x2d.dtype),
        grid=(n // tm, f // tn),
        in_specs=[
            pl.BlockSpec((tm, d), lambda i, j: (i, 0)),
            pl.BlockSpec((1, d), lambda i, j: (0, 0)),
            pl.BlockSpec((d, tn), lambda i, j: (0, j)),
        ],
        out_specs=pl.BlockSpec((tm, tn), lambda i, j: (i, j)),
        compiler_params=pltpu.CompilerParams(
            dimension_semantics=("parallel", "parallel"),
            vmem_limit_bytes=VMEM_LIMIT,
        ),
    )(x2d, norm_w.reshape(1, -1), wqkv)


# ------------- tiled matmul (wo) with f32 accumulator + residual add -------------
def _matmul_residual_kernel(x_ref, w_ref, r_ref, o_ref, acc_ref):
    @pl.when(pl.program_id(2) == 0)
    def _():
        acc_ref[...] = jnp.zeros_like(acc_ref)

    acc_ref[...] += jnp.dot(x_ref[...], w_ref[...], preferred_element_type=jnp.float32)

    @pl.when(pl.program_id(2) == pl.num_programs(2) - 1)
    def _():
        o_ref[...] = (r_ref[...].astype(jnp.float32) + acc_ref[...]).astype(o_ref.dtype)


def linear_residual(x2d, w, r2d):
    n, k = x2d.shape
    f = w.shape[1]
    tm = _pick_tile(n, 256, 8)
    tn = _pick_tile(f, 512, 128)
    tk = _pick_tile(k, 512, 128)
    return pl.pallas_call(
        _matmul_residual_kernel,
        out_shape=jax.ShapeDtypeStruct((n, f), r2d.dtype),
        grid=(n // tm, f // tn, k // tk),
        in_specs=[
            pl.BlockSpec((tm, tk), lambda i, j, kk: (i, kk)),
            pl.BlockSpec((tk, tn), lambda i, j, kk: (kk, j)),
            pl.BlockSpec((tm, tn), lambda i, j, kk: (i, j)),
        ],
        out_specs=pl.BlockSpec((tm, tn), lambda i, j, kk: (i, j)),
        scratch_shapes=[pltpu.VMEM((tm, tn), jnp.float32)],
        compiler_params=pltpu.CompilerParams(
            dimension_semantics=("parallel", "parallel", "arbitrary"),
            vmem_limit_bytes=VMEM_LIMIT,
        ),
    )(x2d, w, r2d)


# ------------------------- attention core (GQA via index_map) --------------------
def _attn_kernel(scale, start_pos, q_ref, k_ref, v_ref, o_ref):
    n_rep, s, hd = q_ref.shape[1], q_ref.shape[2], q_ref.shape[3]
    t = k_ref.shape[2]

    # scale folded into q (S*n_rep*hd mults instead of S*n_rep*T)
    q = (q_ref[0].astype(jnp.float32) * scale).reshape(n_rep * s, hd)
    k = k_ref[0, 0].astype(jnp.float32)          # (t, hd) — one KV head, not repeated
    v = v_ref[0, 0].astype(jnp.float32)

    scores = jax.lax.dot_general(
        q, k, (((1,), (1,)), ((), ())), preferred_element_type=jnp.float32
    )                                            # (n_rep*s, t)

    # causal mask built in-kernel (no (S,T) mask array DMA)
    q_pos = jax.lax.broadcasted_iota(jnp.int32, (n_rep, s, t), 1).reshape(n_rep * s, t)
    k_pos = jax.lax.broadcasted_iota(jnp.int32, (n_rep * s, t), 1)
    scores = jnp.where(k_pos <= q_pos + start_pos, scores, -jnp.inf)

    m = jnp.max(scores, axis=-1, keepdims=True)
    p = jnp.exp(scores - m)
    denom = jnp.sum(p, axis=-1, keepdims=True)
    p = p * pl.reciprocal(denom, approx=True)    # EUP reciprocal instead of VPU divide

    o = jnp.dot(p, v, preferred_element_type=jnp.float32)   # (n_rep*s, hd)
    o_ref[0] = o.reshape(n_rep, s, hd).astype(o_ref.dtype)


def attention_core(q_bhsd, keys_bkth, values_bkth, start_pos, head_dim):
    # q: (B, H, S, hd); keys/values: (B, KVH, T, hd)   (head-major, no repeat_kv)
    b, h, s, hd = q_bhsd.shape
    kvh, t = keys_bkth.shape[1], keys_bkth.shape[2]
    n_rep = h // kvh
    scale = 1.0 / math.sqrt(head_dim)
    return pl.pallas_call(
        functools.partial(_attn_kernel, scale, start_pos),
        out_shape=jax.ShapeDtypeStruct((b, h, s, hd), q_bhsd.dtype),
        grid=(b, kvh),
        in_specs=[
            pl.BlockSpec((1, n_rep, s, hd), lambda i, j: (i, j, 0, 0)),
            pl.BlockSpec((1, 1, t, hd), lambda i, j: (i, j, 0, 0)),
            pl.BlockSpec((1, 1, t, hd), lambda i, j: (i, j, 0, 0)),
        ],
        out_specs=pl.BlockSpec((1, n_rep, s, hd), lambda i, j: (i, j, 0, 0)),
        compiler_params=pltpu.CompilerParams(
            dimension_semantics=("parallel", "parallel"),
            vmem_limit_bytes=VMEM_LIMIT,
        ),
    )(q_bhsd, keys_bkth, values_bkth)


# ------------- fused RMSNorm + SwiGLU FFN + residual, tiled over hidden -----------
def _ffn_kernel(eps, h_ref, nw_ref, w1_ref, w3_ref, w2_ref, o_ref, acc_ref, xn_ref):
    @pl.when(pl.program_id(1) == 0)
    def _():
        x = h_ref[...].astype(jnp.float32)
        ms = jnp.mean(x * x, axis=-1, keepdims=True)
        xn_ref[...] = x * jax.lax.rsqrt(ms + eps) * nw_ref[...].astype(jnp.float32)
        acc_ref[...] = jnp.zeros_like(acc_ref)

    xn = xn_ref[...]
    h1 = jnp.dot(xn, w1_ref[...], preferred_element_type=jnp.float32)
    h3 = jnp.dot(xn, w3_ref[...], preferred_element_type=jnp.float32)
    g = (h1 * jax.lax.logistic(h1)) * h3                      # silu(w1 x) * (w3 x), f32
    acc_ref[...] += jnp.dot(g, w2_ref[...], preferred_element_type=jnp.float32)

    @pl.when(pl.program_id(1) == pl.num_programs(1) - 1)
    def _():
        o_ref[...] = (h_ref[...].astype(jnp.float32) + acc_ref[...]).astype(o_ref.dtype)


def ffn(h2d, norm_w, w1, w3, w2, eps):
    n, d = h2d.shape
    f = w1.shape[1]
    tm = _pick_tile(n, 256, 8)
    tf = _pick_tile(f, 512, 128)
    return pl.pallas_call(
        functools.partial(_ffn_kernel, eps),
        out_shape=jax.ShapeDtypeStruct((n, d), h2d.dtype),
        grid=(n // tm, f // tf),
        in_specs=[
            pl.BlockSpec((tm, d), lambda i, k: (i, 0)),
            pl.BlockSpec((1, d), lambda i, k: (0, 0)),
            pl.BlockSpec((d, tf), lambda i, k: (0, k)),
            pl.BlockSpec((d, tf), lambda i, k: (0, k)),
            pl.BlockSpec((tf, d), lambda i, k: (k, 0)),
        ],
        out_specs=pl.BlockSpec((tm, d), lambda i, k: (i, 0)),
        scratch_shapes=[
            pltpu.VMEM((tm, d), jnp.float32),   # accumulator
            pltpu.VMEM((tm, d), jnp.float32),   # cached normalized x
        ],
        compiler_params=pltpu.CompilerParams(
            dimension_semantics=("parallel", "arbitrary"),
            vmem_limit_bytes=VMEM_LIMIT,
        ),
    )(h2d, norm_w.reshape(1, -1), w1, w3, w2)


# ------------------------------------ JAX glue ------------------------------------
def precompute_rope(head_dim, max_seq_len, theta):
    freqs = 1.0 / (theta ** (jnp.arange(0, head_dim, 2, dtype=jnp.float32) / head_dim))
    t = jnp.arange(max_seq_len, dtype=jnp.float32)
    angles = jnp.outer(t, freqs)                               # (max_seq_len, hd//2)
    return jnp.cos(angles), jnp.sin(angles)


def apply_rotary_emb(xq, xk, cos, sin):
    # xq: (B, S, H, hd), xk: (B, S, KVH, hd), cos/sin: (S, hd//2)
    # TODO(synk): fuse RoPE into the QKV kernel (half-split layout via pltpu.roll).
    def rot(x):
        xr = x.astype(jnp.float32).reshape(*x.shape[:-1], -1, 2)
        x0, x1 = xr[..., 0], xr[..., 1]
        c = cos[None, :, None, :]
        s = sin[None, :, None, :]
        o0 = x0 * c - x1 * s
        o1 = x0 * s + x1 * c
        return jnp.stack([o0, o1], axis=-1).reshape(x.shape).astype(x.dtype)

    return rot(xq), rot(xk)


def transformer_block_forward(x, start_pos, cos, sin, params, cfg):
    B, S, D = x.shape
    H, KVH, hd = cfg["n_heads"], cfg["n_kv_heads"], cfg["head_dim"]
    eps = cfg["norm_eps"]
    x2d = x.reshape(B * S, D)

    # --- attention branch: fused RMSNorm + [wq|wk|wv] projection ---
    qkv = norm_qkv(x2d, params["attn_norm_w"], params["wqkv"], eps)
    q_w, kv_w = H * hd, KVH * hd
    xq = qkv[:, :q_w].reshape(B, S, H, hd)
    xk = qkv[:, q_w:q_w + kv_w].reshape(B, S, KVH, hd)
    xv = qkv[:, q_w + kv_w:].reshape(B, S, KVH, hd)

    xq, xk = apply_rotary_emb(xq, xk, cos, sin)

    # KV cache is stored head-major (max_batch, KVH, max_seq, hd): the attention
    # kernel reads one KV head per grid step via index_map — no repeat_kv, no
    # cache transpose on the hot path.
    xk_t = xk.transpose(0, 2, 1, 3)
    xv_t = xv.transpose(0, 2, 1, 3)
    cache_k = jax.lax.dynamic_update_slice(params["cache_k"], xk_t, (0, 0, start_pos, 0))
    cache_v = jax.lax.dynamic_update_slice(params["cache_v"], xv_t, (0, 0, start_pos, 0))
    T = start_pos + S
    keys = cache_k[:B, :, :T]
    values = cache_v[:B, :, :T]

    q_t = xq.transpose(0, 2, 1, 3)                             # (B, H, S, hd)
    attn = attention_core(q_t, keys, values, start_pos, hd)    # (B, H, S, hd)
    attn2d = attn.transpose(0, 2, 1, 3).reshape(B * S, H * hd)

    h2d = linear_residual(attn2d, params["wo"], x2d)           # x + attn @ wo

    # --- FFN branch: fused norm + SwiGLU + residual ---
    out2d = ffn(h2d, params["ffn_norm_w"], params["w1"], params["w3"], params["w2"], eps)
    return out2d.reshape(B, S, D), cache_k, cache_v


# ------------------------------ Pure-JAX reference ---------------------------------
def ref_forward(x, start_pos, cos, sin, mask, params, cfg):
    B, S, D = x.shape
    H, KVH, hd = cfg["n_heads"], cfg["n_kv_heads"], cfg["head_dim"]
    n_rep = H // KVH
    eps = cfg["norm_eps"]

    wq = params["wqkv"][:, : H * hd]
    wk = params["wqkv"][:, H * hd : H * hd + KVH * hd]
    wv = params["wqkv"][:, H * hd + KVH * hd :]

    def rms(t, w):
        tf = t.astype(jnp.float32)
        return tf * jax.lax.rsqrt(jnp.mean(tf * tf, -1, keepdims=True) + eps) * w

    xn = rms(x, params["attn_norm_w"])
    xq = (xn.reshape(B * S, D) @ wq).reshape(B, S, H, hd)
    xk = (xn.reshape(B * S, D) @ wk).reshape(B, S, KVH, hd)
    xv = (xn.reshape(B * S, D) @ wv).reshape(B, S, KVH, hd)
    xq, xk = apply_rotary_emb(xq, xk, cos, sin)

    cache_k0 = params["cache_k"].transpose(0, 2, 1, 3)         # (MB, MS, KVH, hd), zeros
    cache_v0 = params["cache_v"].transpose(0, 2, 1, 3)
    ck = jax.lax.dynamic_update_slice(cache_k0, xk, (0, start_pos, 0, 0))
    cv = jax.lax.dynamic_update_slice(cache_v0, xv, (0, start_pos, 0, 0))
    keys = jnp.repeat(ck[:B, : start_pos + S], n_rep, axis=2)
    values = jnp.repeat(cv[:B, : start_pos + S], n_rep, axis=2)

    q = xq.transpose(0, 2, 1, 3)
    k = keys.transpose(0, 2, 1, 3)
    v = values.transpose(0, 2, 1, 3)
    scores = jnp.einsum("bhsd,bhtd->bhst", q, k) / math.sqrt(hd) + mask[None, None]
    probs = jax.nn.softmax(scores.astype(jnp.float32), axis=-1)
    o = jnp.einsum("bhst,bhtd->bhsd", probs, v)
    o = o.transpose(0, 2, 1, 3).reshape(B, S, H * hd)
    h = x + (o.reshape(B * S, -1) @ params["wo"]).reshape(B, S, D)

    hn = rms(h, params["ffn_norm_w"])
    h1 = hn.reshape(B * S, D) @ params["w1"]
    h3 = hn.reshape(B * S, D) @ params["w3"]
    g = jax.nn.silu(h1) * h3
    out = h + (g @ params["w2"]).reshape(B, S, D)
    return out


# -------------------------------------- main ---------------------------------------
if __name__ == "__main__":
    cfg = dict(
        dim=64,
        n_heads=4,
        n_kv_heads=2,
        head_dim=16,
        multiple_of=32,
        norm_eps=1e-5,
        rope_theta=500000.0,
        max_batch_size=2,
        max_seq_len=16,
    )
    D, H, KVH, hd = cfg["dim"], cfg["n_heads"], cfg["n_kv_heads"], cfg["head_dim"]
    # FeedForward hidden dim: 4*dim -> 2/3 -> round up to multiple_of
    hidden = 4 * D
    hidden = int(2 * hidden / 3)
    hidden = cfg["multiple_of"] * ((hidden + cfg["multiple_of"] - 1) // cfg["multiple_of"])

    B, S, start_pos = 2, 8, 0

    key = jax.random.PRNGKey(0)
    ks = jax.random.split(key, 8)

    def init(k, shape, fan_in):
        return (jax.random.normal(k, shape, jnp.float32) / math.sqrt(fan_in)).astype(jnp.float32)

    wq = init(ks[0], (D, H * hd), D)
    wk = init(ks[1], (D, KVH * hd), D)
    wv = init(ks[2], (D, KVH * hd), D)

    params = dict(
        wqkv=jnp.concatenate([wq, wk, wv], axis=1),            # fused QKV weight
        wo=init(ks[3], (H * hd, D), H * hd),
        w1=init(ks[4], (D, hidden), D),
        w3=init(ks[5], (D, hidden), D),
        w2=init(ks[6], (hidden, D), hidden),
        attn_norm_w=jnp.ones((D,), jnp.float32),               # RMSNorm init: ones
        ffn_norm_w=jnp.ones((D,), jnp.float32),
        # KV cache stored head-major: (max_batch, n_kv_heads, max_seq, head_dim)
        cache_k=jnp.zeros((cfg["max_batch_size"], KVH, cfg["max_seq_len"], hd), jnp.float32),
        cache_v=jnp.zeros((cfg["max_batch_size"], KVH, cfg["max_seq_len"], hd), jnp.float32),
    )

    x = jax.random.normal(ks[7], (B, S, D), jnp.float32)

    cos_full, sin_full = precompute_rope(hd, cfg["max_seq_len"], cfg["rope_theta"])
    cos = cos_full[start_pos : start_pos + S]
    sin = sin_full[start_pos : start_pos + S]

    out, cache_k, cache_v = transformer_block_forward(x, start_pos, cos, sin, params, cfg)
    out = jax.block_until_ready(out)

    # causal mask used only by the pure-JAX reference (kernel builds it in-kernel)
    mask = jnp.triu(jnp.full((S, S), float("-inf"), jnp.float32), k=1)
    mask = jnp.concatenate([jnp.zeros((S, start_pos), jnp.float32), mask], axis=1)
    ref = ref_forward(x, start_pos, cos, sin, mask, params, cfg)

    assert bool(jnp.all(jnp.isfinite(out)))
    max_diff = float(jnp.max(jnp.abs(out - ref)))
    assert max_diff < 2e-2, f"mismatch vs reference: {max_diff}"

    print("KERNEL_OK")
</pallas_src>

<mosaic_0001>
module attributes {stable_mosaic.version = 11 : i64} {
  func.func @_norm_qkv_kernel(%arg0: i32, %arg1: i32, %arg2: memref<16x64xf32, #tpu.memory_space<vmem>>, %arg3: memref<1x64xf32, #tpu.memory_space<vmem>>, %arg4: memref<64x128xf32, #tpu.memory_space<vmem>>, %arg5: memref<16x128xf32, #tpu.memory_space<vmem>>) attributes {dimension_semantics = [#tpu.dimension_semantics<parallel>, #tpu.dimension_semantics<parallel>], iteration_bounds = array<i64: 1, 1>, scalar_prefetch = 0 : i64, scratch_operands = 0 : i64, tpu.core_type = #tpu.core_type<tc>, window_params = [{transform_indices = @transform_0, window_bounds = array<i64: 16, 64>}, {pipeline_mode = #tpu.pipeline_mode<synchronous>, transform_indices = @transform_1, window_bounds = array<i64: 1, 64>}, {transform_indices = @transform_2, window_bounds = array<i64: 64, 128>}, {transform_indices = @transform_3, window_bounds = array<i64: 16, 128>}]} {
    %c0 = arith.constant 0 : index
    %c0_0 = arith.constant 0 : index
    %0 = vector.load %arg2[%c0, %c0_0] : memref<16x64xf32, #tpu.memory_space<vmem>>, vector<16x64xf32>
    %1 = arith.mulf %0, %0 : vector<16x64xf32>
    %cst = arith.constant dense<0.000000e+00> : vector<16xf32>
    %2 = vector.multi_reduction <add>, %1, %cst [1] : vector<16x64xf32> to vector<16xf32>
    %3 = vector.shape_cast %2 : vector<16xf32> to vector<16x1xf32>
    %cst_1 = arith.constant 6.400000e+01 : f32
    %4 = vector.broadcast %cst_1 : f32 to vector<16x1xf32>
    %5 = arith.divf %3, %4 : vector<16x1xf32>
    %cst_2 = arith.constant 9.99999974E-6 : f32
    %6 = vector.broadcast %cst_2 : f32 to vector<16x1xf32>
    %7 = arith.addf %5, %6 : vector<16x1xf32>
    %8 = math.rsqrt %7 : vector<16x1xf32>
    %9 = vector.broadcast %8 : vector<16x1xf32> to vector<16x64xf32>
    %10 = arith.mulf %0, %9 : vector<16x64xf32>
    %c0_3 = arith.constant 0 : index
    %c0_4 = arith.constant 0 : index
    %11 = vector.load %arg3[%c0_3, %c0_4] : memref<1x64xf32, #tpu.memory_space<vmem>>, vector<1x64xf32>
    %12 = vector.broadcast %11 : vector<1x64xf32> to vector<16x64xf32>
    %13 = arith.mulf %10, %12 : vector<16x64xf32>
    %c0_5 = arith.constant 0 : index
    %c0_6 = arith.constant 0 : index
    %14 = vector.load %arg4[%c0_5, %c0_6] : memref<64x128xf32, #tpu.memory_space<vmem>>, vector<64x128xf32>
    %cst_7 = arith.constant dense<0.000000e+00> : vector<16x128xf32>
    %15 = tpu.matmul %13, %14, %cst_7 {dimension_numbers = #tpu.dot_dimension_numbers<[1], [0], [0], [1], [0, 0, 1, 1], [], []>} : vector<16x64xf32>, vector<64x128xf32>, vector<16x128xf32> -> vector<16x128xf32>
    %c0_8 = arith.constant 0 : index
    %c0_9 = arith.constant 0 : index
    %16 = vector.load %arg5[%c0_8, %c0_9] : memref<16x128xf32, #tpu.memory_space<vmem>>, vector<16x128xf32>
    tpu.vector_store %arg5[%c0_8, %c0_9], %15 {strides = array<i32>} : memref<16x128xf32, #tpu.memory_space<vmem>>, vector<16x128xf32>,
    return
  }
  func.func @transform_0(%arg0: i32, %arg1: i32) -> (i32, i32) {
    %c0_i32 = arith.constant 0 : i32
    %c0_i32_0 = arith.constant 0 : i32
    return %arg0, %c0_i32 : i32, i32
  }
  func.func @transform_1(%arg0: i32, %arg1: i32) -> (i32, i32) {
    %c0_i32 = arith.constant 0 : i32
    %c0_i32_0 = arith.constant 0 : i32
    %c0_i32_1 = arith.constant 0 : i32
    return %c0_i32, %c0_i32_0 : i32, i32
  }
  func.func @transform_2(%arg0: i32, %arg1: i32) -> (i32, i32) {
    %c0_i32 = arith.constant 0 : i32
    %c0_i32_0 = arith.constant 0 : i32
    return %c0_i32, %arg1 : i32, i32
  }
  func.func @transform_3(%arg0: i32, %arg1: i32) -> (i32, i32) {
    %c0_i32 = arith.constant 0 : i32
    return %arg0, %arg1 : i32, i32
  }
}

</mosaic_0001>

<bundles_post_ra>
// kernel: tpu_custom_call.1
= control target key start
LH: loop header
LB: loop body
LE: loop exit
PB: predicated region body
PF: predicated region fallthrough
CT: control target
= control target key end

     0   :  { %8 = vsyncpa [#allocation3], 0  ;;  %s387_s0 = inlined_call_operand.hbm [shape: f32[16,64], index: 0, kind: input, shape index: {}]   ;;  %s388_s1 = inlined_call_operand.vmem [shape: f32[1,64], index: 1, kind: input, shape index: {}]   ;;  %s389_s2 = inlined_call_operand.hbm [shape: f32[64,128], index: 2, kind: input, shape index: {}]   ;;  %s390_s3 = inlined_call_operand.hbm [shape: f32[16,128], index: 3, kind: output, shape index: {}]  }
   0x1   :  { %9 = vsyncpa [#allocation6], 0 }
   0x2   :  { %10 = vsyncpa [#allocation4], 0  ;;  %s310_s12 = smov [#allocation2]   ;;  %s238_s16 = scalar_lea.hbm %s387_s0, 256 }
   0x3   :  { %s16_s13 = sshll.u32 %s310_s12, 4  ;;  %p239_p0 = scmp.ne.s32.totalorder %s387_s0, %s238_s16  ;;  %s17_s13 = int_to_ptr.vmem [resolvable:$true] %s16_s13 }
   0x4   :  { %p242_p1 = scmp.lt.u32.totalorder %s238_s16, %s387_s0 }
   0x6   :  { %p244_p2 = pnand %p242_p1, %p239_p0 }
   0x8   :  { %247 = shalt.err (!%p244_p2)
}
   0x9   :  { %s248_s21 = scalar_lea.vmem %s17_s13, 256  ;;  %p253_p4 = scmp.lt.s32.totalorder %s17_s13, %s17_s13 }
   0xa   :  { %p249_p3 = scmp.ne.s32.totalorder %s17_s13, %s248_s21  ;;  %p254_p5 = scmp.lt.s32.totalorder %s248_s21, %s248_s21 }
   0xc   :  { %p255_p6 = por %p254_p5, %p253_p4 }
   0xe   :  { %p256_p7 = pnand %p255_p6, %p249_p3 }
  0x10   :  { %259 = shalt.err (!%p256_p7)
}
  0x11   :  { %s311_s22 = smov 128   ;;  %s312_s23 = smov 8  }
  0x12   :  { %22 = dma.hbm_to_vmem [thread:$0]  %s387_s0, 256, %s17_s13, [#allocation3], %s311_s22, %s311_s22, %s312_s23  }
  0x13   :  { %s313_s26 = smov [#allocation5]   ;;  %s260_s30 = scalar_lea.hbm %s389_s2, 1024 }
  0x14   :  { %s30_s27 = sshll.u32 %s313_s26, 4  ;;  %p261_p8 = scmp.ne.s32.totalorder %s389_s2, %s260_s30  ;;  %s31_s27 = int_to_ptr.vmem [resolvable:$true] %s30_s27 }
  0x15   :  { %p264_p9 = scmp.lt.u32.totalorder %s260_s30, %s389_s2 }
  0x17   :  { %p266_p10 = pnand %p264_p9, %p261_p8 }
  0x19   :  { %269 = shalt.err (!%p266_p10)
}
  0x1a   :  { %s270_s8 = scalar_lea.vmem %s31_s27, 1024  ;;  %p275_p12 = scmp.lt.s32.totalorder %s31_s27, %s31_s27 }
  0x1b   :  { %p271_p11 = scmp.ne.s32.totalorder %s31_s27, %s270_s8  ;;  %p276_p13 = scmp.lt.s32.totalorder %s270_s8, %s270_s8 }
  0x1d   :  { %p277_p0 = por %p276_p13, %p275_p12 }
  0x1f   :  { %p278_p1 = pnand %p277_p0, %p271_p11 }
  0x21   :  { %281 = shalt.err (!%p278_p1)
}
  0x22   :  { %36 = dma.hbm_to_vmem [thread:$0]  %s389_s2, 1024, %s31_s27, [#allocation6], %s311_s22, %s311_s22, %s312_s23  }
  0x23   :  { %304 = dma.done.wait [#allocation3], 256  }
  0x24   :  { %305 = vsyncadd [#allocation3], 4294967040 }
  0x25   :  { %306 = dma.done.wait [#allocation6], 1024  }
  0x26   :  { %307 = vsyncadd [#allocation6], 4294966272  ;;  %v43_v0 = vld [vmem:[#allocation2] sm:$0xff]  ;;  %vm47_vm0 = vcmask 523264   ;;  %v44_v1 = vld [vmem:[#allocation2 + $0x8] sm:$0xff]  ;;  %s314_s11 = smov [#allocation7]  }
  0x27   :  { %v45_v2 = vmul.f32 %v43_v0, %v43_v0  ;;  %v46_v3 = vmul.f32 %v44_v1, %v44_v1  ;;  %v72_v6 = vld [vmem:[#allocation5] sm:$0xff]  ;;  %v73_v7 = vld [vmem:[#allocation5 + $0x8] sm:$0xff]  ;;  %v74_v9 = vld [vmem:[#allocation5 + $0x10] sm:$0xff]  ;;  %s168_s12 = sshll.u32 %s314_s11, 4  ;;  %s169_s12 = int_to_ptr.vmem [resolvable:$true] %s168_s12 }
  0x28   :  { %v213_v8 = vpack.c.bf16 %v73_v7, %v72_v6  ;;  %v75_v10 = vld [vmem:[#allocation5 + $0x18] sm:$0xff]  ;;  %v76_v11 = vld [vmem:[#allocation5 + $0x20] sm:$0xff]  ;;  %v77_v13 = vld [vmem:[#allocation5 + $0x28] sm:$0xff]  ;;  %s282_s13 = scalar_lea.vmem %s169_s12, 256  ;;  %p287_p3 = scmp.lt.s32.totalorder %s169_s12, %s169_s12 }
  0x29   :  { %v48_v4 = vsel %vm47_vm0, %v45_v2, 0.0  ;;  %v51_v5 = vsel %vm47_vm0, %v46_v3, 0.0  ;;  %v217_v12 = vpack.c.bf16 %v75_v10, %v74_v9  ;;  %v221_v14 = vpack.c.bf16 %v77_v13, %v76_v11  ;;  %v78_v15 = vld [vmem:[#allocation5 + $0x30] sm:$0xff]  ;;  %v79_v16 = vld [vmem:[#allocation5 + $0x38] sm:$0xff]  ;;  %p283_p2 = scmp.ne.s32.totalorder %s169_s12, %s282_s13  ;;  %p288_p4 = scmp.lt.s32.totalorder %s282_s13, %s282_s13 }
  0x2a   :  { %49 = vadd.xlane.f32.xlu0 %v48_v4  ;;  %214 = vmatprep.subr.bf16.mxu0 %v213_v8  ;;  %v225_v17 = vpack.c.bf16 %v79_v16, %v78_v15  ;;  %v181_v25 = vld [vmem:[%s388_s1] ss:$0 sm:$0xff] }
  0x2b   :  { %216 = vmatpush3.bf16.msra.mxu0 %v213_v8  ;;  %p289_p5 = por %p288_p4, %p287_p3 }
  0x2c   :  { %218 = vmatprep.subr.bf16.mxu0 %v217_v12 }
  0x2d   :  { %p290_p6 = pnand %p289_p5, %p283_p2 }
  0x2e   :  { %52 = vadd.xlane.f32.xlu0 %v51_v5 }
  0x2f   :  { %220 = vmatpush3.bf16.msra.mxu0 %v217_v12 }
  0x30   :  { %222 = vmatprep.subr.bf16.mxu0 %v221_v14 }
  0x33   :  { %224 = vmatpush3.bf16.msra.mxu0 %v221_v14 }
  0x34   :  { %226 = vmatprep.subr.bf16.mxu0 %v225_v17 }
  0x37   :  { %228 = vmatpush3.bf16.msra.mxu0 %v225_v17 }
  0xb7   :  { %v50_v18 = vpop.xlane.xlu0 %49 }
  0xb8   :  { %v55_v19 = vmul.f32 0.015625, %v50_v18 }
  0xba   :  { %v57_v20 = vadd.f32 1e-05, %v55_v19 }
  0xbb   :  { %v53_v21 = vpop.xlane.xlu0 %52 }
  0xbc   :  { %234 = vrsqrt.f32 %v57_v20  ;;  %v56_v22 = vmul.f32 0.015625, %v53_v21 }
  0xbe   :  { %v58_v23 = vadd.f32 1e-05, %v56_v22 }
  0xc0   :  { %236 = vrsqrt.f32 %v58_v23 }
  0xc6   :  { %v235_v24 = vpop.eup %234 }
  0xc7   :  { %v61_v26 = vmul.f32 %v235_v24, %v43_v0 }
  0xc9   :  { %v70_v27 = vmul.f32 %v181_v25, %v61_v26 }
  0xca   :  { %v237_v28 = vpop.eup %236 }
  0xcb   :  { %v62_v29 = vmul.f32 %v237_v28, %v44_v1  ;;  %210 = vmatprep.mubr.msk.f32.mxu0 %vm47_vm0, %v70_v27 }
  0xcd   :  { %v71_v30 = vmul.f32 %v181_v25, %v62_v29 }
  0xcf   :  { %211 = vmatmul.mubr.msk.f32.vlgmr.msra.gmra.mrb[0].mxu0 %vm47_vm0, %v71_v30 }
 0x1a2   :  { %v212_v31 = vpop.f32.mrb[0].mxu0 }
 0x1a3   :  { %162 = vst [vmem:[#allocation7 + $0x8] sm:$0xff] %v212_v31  ;;  %v152_v32 = vpop.f32.mrb[1].mxu0 }
 0x1a4   :  { %161 = vst [vmem:[#allocation7] sm:$0xff] %v152_v32 }
 0x1a5   :  { %293 = shalt.err (!%p290_p6)
}
 0x1a6   :  { %s294_s15 = scalar_lea.hbm %s390_s3, 256 }
 0x1a7   :  { %p295_p7 = scmp.ne.s32.totalorder %s390_s3, %s294_s15  ;;  %p298_p8 = scmp.lt.u32.totalorder %s294_s15, %s390_s3 }
 0x1a9   :  { %p300_p9 = pnand %p298_p8, %p295_p7 }
 0x1ab   :  { %303 = shalt.err (!%p300_p9)
}
 0x1ac   :  { %174 = dma.vmem_to_hbm [thread:$0]  %s169_s12, 256, %s390_s3, [#allocation4], %s311_s22, %s311_s22, %s312_s23  }
 0x1ad   :  { %308 = dma.done.wait [#allocation4], 256  }
 0x1ae   :  { %309 = vsyncadd [#allocation4], 4294967040 }
 0x1af   :  { %178 = vsyncpa [#allocation3], 1 }
 0x1b0   :  { %179 = vsyncpa [#allocation6], 1 }
 0x1b1   :  { %180 = vsyncpa [#allocation4], 1 }

</bundles_post_ra>
